<compile_context>
chip_gen: v7x
topology: tpu7x:2x2x1
jax: 0.10.0
libtpu: 0.0.40
codegen_flags: <defaults>
</compile_context>

<pallas_src>
import jax
import jax.numpy as jnp
from jax.experimental import pallas as pl
from jax.experimental.pallas import tpu as pltpu


N_LAYERS = 8   # 4 encoder linears + 4 decoder linears
N_ENC = 4


def _round_up(v, m):
    return (v + m - 1) // m * m


def _ae_kernel(x_ref, *refs):
    """refs = [w0, b0, w1, b1, ..., w7, b7, en_ref, de_ref]."""
    param_refs = refs[: 2 * N_LAYERS]
    en_ref = refs[2 * N_LAYERS]
    de_ref = refs[2 * N_LAYERS + 1]

    h = x_ref[...]

    def linear(h, li, relu):
        w = param_refs[2 * li][...]
        b = param_refs[2 * li + 1][...].astype(jnp.float32)
        acc = jnp.dot(h.astype(w.dtype), w,
                      preferred_element_type=jnp.float32) + b
        if relu:
            acc = jnp.maximum(acc, 0.0)
        return acc

    # ---- encoder: Linear/ReLU x3, final Linear (no ReLU) ----
    for li in range(N_ENC):
        h = linear(h, li, relu=(li != N_ENC - 1))
    en_ref[...] = h.astype(en_ref.dtype)

    # ---- decoder: Linear/ReLU x3, final Linear (no ReLU) ----
    for li in range(N_ENC, N_LAYERS):
        h = linear(h, li, relu=(li != N_LAYERS - 1))
    de_ref[...] = h.astype(de_ref.dtype)


def autoencoder_forward(x, params, *, block_b=2048, compute_dtype=None):
    """x: (B, n_in) f32; params: 8 tuples (W_T, b) with W_T (in, out), b (1, out).

    compute_dtype: None -> exact f32 math + f32 outputs (matches PyTorch);
                   jnp.bfloat16 -> bf16 weights/activations, f32 MXU
                   accumulation, bf16 outputs (halves HBM traffic).
    """
    B, n_in = x.shape
    latent = params[N_ENC - 1][0].shape[1]  # encoder_units[-1]
    out_dtype = jnp.float32 if compute_dtype is None else compute_dtype

    if compute_dtype is not None:
        # Only the tiny weights are cast outside the kernel; x stays f32 in
        # HBM and is cast per-layer inside (no extra HBM pass over x).
        params = [(w.astype(compute_dtype), b) for (w, b) in params]

    # Batch tile: multiple of the f32 sublane packing (8), capped at block_b,
    # split so we get >=2 balanced grid steps (megacore) when batch allows.
    sub = 8
    if B >= 2 * sub:
        tb = min(_round_up(block_b, sub), _round_up(pl.cdiv(B, 2), sub))
    else:
        tb = _round_up(B, sub)
    tb = max(tb, sub)
    grid = (pl.cdiv(B, tb),)  # partial last block handled/masked by Pallas

    flat = []
    in_specs = [pl.BlockSpec((tb, n_in), lambda i: (i, 0))]
    for w, b in params:
        flat.extend([w, b])
        # Constant index_map -> parameters stay resident in VMEM across steps.
        in_specs.append(pl.BlockSpec(w.shape, lambda i: (0, 0)))
        in_specs.append(pl.BlockSpec(b.shape, lambda i: (0, 0)))

    out_shape = (jax.ShapeDtypeStruct((B, latent), out_dtype),
                 jax.ShapeDtypeStruct((B, n_in), out_dtype))
    # Block last-dim == full array dim, so the (8,128) rule is bypassed and
    # en/de are emitted directly (no lane padding, no post-kernel slicing).
    out_specs = (pl.BlockSpec((tb, latent), lambda i: (i, 0)),
                 pl.BlockSpec((tb, n_in), lambda i: (i, 0)))

    en, de = pl.pallas_call(
        _ae_kernel,
        out_shape=out_shape,
        grid=grid,
        in_specs=in_specs,
        out_specs=out_specs,
        compiler_params=pltpu.CompilerParams(
            dimension_semantics=("parallel",),
            vmem_limit_bytes=48 * 1024 * 1024),
    )(x, *flat)
    return en, de


def init_autoencoder_params(key, n_in, encoder_units):
    """PyTorch-Linear-style init: U(-1/sqrt(fan_in), 1/sqrt(fan_in))."""
    enc = list(encoder_units)
    dec = list(reversed(encoder_units))
    dims = [
        (n_in, enc[0]), (enc[0], enc[1]), (enc[1], enc[2]), (enc[2], enc[3]),
        (dec[0], dec[1]), (dec[1], dec[2]), (dec[2], dec[3]), (dec[3], n_in),
    ]
    params = []
    for d_in, d_out in dims:
        key, kw, kb = jax.random.split(key, 3)
        bound = 1.0 / jnp.sqrt(jnp.float32(d_in))
        # PyTorch weight is (out, in); store transposed as (in, out) for x @ W.
        w_pt = jax.random.uniform(kw, (d_out, d_in), jnp.float32, -bound, bound)
        b = jax.random.uniform(kb, (1, d_out), jnp.float32, -bound, bound)
        params.append((w_pt.T, b))
    return params


def _reference_forward(x, params, compute_dtype=None):
    """Plain-JAX reference mirroring the kernel's casting rules."""
    def cast(a):
        return a.astype(compute_dtype) if compute_dtype is not None else a

    h = x
    for li, (w, b) in enumerate(params[:N_ENC]):
        h = jnp.dot(cast(h), cast(w),
                    preferred_element_type=jnp.float32) + b.astype(jnp.float32)
        if li != N_ENC - 1:
            h = jnp.maximum(h, 0.0)
    en = h
    for li, (w, b) in enumerate(params[N_ENC:]):
        h = jnp.dot(cast(h), cast(w),
                    preferred_element_type=jnp.float32) + b.astype(jnp.float32)
        if li != N_LAYERS - N_ENC - 1:
            h = jnp.maximum(h, 0.0)
    return en, h


if __name__ == "__main__":
    key = jax.random.PRNGKey(0)
    k_x, k_p, k_x2 = jax.random.split(key, 3)

    n_in = 32
    encoder_units = [64, 48, 16, 8]
    params = init_autoencoder_params(k_p, n_in, encoder_units)

    # --- small batch, exact f32 semantics (matches PyTorch module) ---
    B = 8
    x = jax.random.normal(k_x, (B, n_in), jnp.float32)
    en, de = autoencoder_forward(x, params)
    jax.block_until_ready((en, de))

    en_ref, de_ref = _reference_forward(x, params)
    assert en.shape == (B, encoder_units[-1])
    assert de.shape == (B, n_in)
    assert jnp.allclose(en, en_ref, atol=1e-5, rtol=1e-5)
    assert jnp.allclose(de, de_ref, atol=1e-5, rtol=1e-5)

    # --- larger batch: exercises the multi-step grid (2 steps, one partial,
    #     masked last block) and the bf16-weights / f32-acc / bf16-out path ---
    B2 = 200
    x2 = jax.random.normal(k_x2, (B2, n_in), jnp.float32)
    en2, de2 = autoencoder_forward(x2, params, block_b=128,
                                   compute_dtype=jnp.bfloat16)
    jax.block_until_ready((en2, de2))

    en2_ref, de2_ref = _reference_forward(x2, params,
                                          compute_dtype=jnp.bfloat16)
    assert en2.shape == (B2, encoder_units[-1])
    assert de2.shape == (B2, n_in)
    assert en2.dtype == jnp.bfloat16 and de2.dtype == jnp.bfloat16
    assert jnp.allclose(en2.astype(jnp.float32), en2_ref, atol=2e-2, rtol=5e-2)
    assert jnp.allclose(de2.astype(jnp.float32), de2_ref, atol=2e-2, rtol=5e-2)

    print("KERNEL_OK")
</pallas_src>

<mosaic_0001>
module attributes {stable_mosaic.version = 11 : i64} {
  func.func @_ae_kernel(%arg0: i32, %arg1: memref<8x32xf32, #tpu.memory_space<vmem>>, %arg2: memref<32x64xf32, #tpu.memory_space<vmem>>, %arg3: memref<1x64xf32, #tpu.memory_space<vmem>>, %arg4: memref<64x48xf32, #tpu.memory_space<vmem>>, %arg5: memref<1x48xf32, #tpu.memory_space<vmem>>, %arg6: memref<48x16xf32, #tpu.memory_space<vmem>>, %arg7: memref<1x16xf32, #tpu.memory_space<vmem>>, %arg8: memref<16x8xf32, #tpu.memory_space<vmem>>, %arg9: memref<1x8xf32, #tpu.memory_space<vmem>>, %arg10: memref<8x16xf32, #tpu.memory_space<vmem>>, %arg11: memref<1x16xf32, #tpu.memory_space<vmem>>, %arg12: memref<16x48xf32, #tpu.memory_space<vmem>>, %arg13: memref<1x48xf32, #tpu.memory_space<vmem>>, %arg14: memref<48x64xf32, #tpu.memory_space<vmem>>, %arg15: memref<1x64xf32, #tpu.memory_space<vmem>>, %arg16: memref<64x32xf32, #tpu.memory_space<vmem>>, %arg17: memref<1x32xf32, #tpu.memory_space<vmem>>, %arg18: memref<8x8xf32, #tpu.memory_space<vmem>>, %arg19: memref<8x32xf32, #tpu.memory_space<vmem>>) attributes {dimension_semantics = [#tpu.dimension_semantics<parallel>], iteration_bounds = array<i64: 1>, scalar_prefetch = 0 : i64, scratch_operands = 0 : i64, tpu.core_type = #tpu.core_type<tc>, window_params = [{transform_indices = @transform_0, window_bounds = array<i64: 8, 32>}, {pipeline_mode = #tpu.pipeline_mode<synchronous>, transform_indices = @transform_1, window_bounds = array<i64: 32, 64>}, {pipeline_mode = #tpu.pipeline_mode<synchronous>, transform_indices = @transform_2, window_bounds = array<i64: 1, 64>}, {pipeline_mode = #tpu.pipeline_mode<synchronous>, transform_indices = @transform_3, window_bounds = array<i64: 64, 48>}, {pipeline_mode = #tpu.pipeline_mode<synchronous>, transform_indices = @transform_4, window_bounds = array<i64: 1, 48>}, {pipeline_mode = #tpu.pipeline_mode<synchronous>, transform_indices = @transform_5, window_bounds = array<i64: 48, 16>}, {pipeline_mode = #tpu.pipeline_mode<synchronous>, transform_indices = @transform_6, window_bounds = array<i64: 1, 16>}, {pipeline_mode = #tpu.pipeline_mode<synchronous>, transform_indices = @transform_7, window_bounds = array<i64: 16, 8>}, {pipeline_mode = #tpu.pipeline_mode<synchronous>, transform_indices = @transform_8, window_bounds = array<i64: 1, 8>}, {pipeline_mode = #tpu.pipeline_mode<synchronous>, transform_indices = @transform_9, window_bounds = array<i64: 8, 16>}, {pipeline_mode = #tpu.pipeline_mode<synchronous>, transform_indices = @transform_10, window_bounds = array<i64: 1, 16>}, {pipeline_mode = #tpu.pipeline_mode<synchronous>, transform_indices = @transform_11, window_bounds = array<i64: 16, 48>}, {pipeline_mode = #tpu.pipeline_mode<synchronous>, transform_indices = @transform_12, window_bounds = array<i64: 1, 48>}, {pipeline_mode = #tpu.pipeline_mode<synchronous>, transform_indices = @transform_13, window_bounds = array<i64: 48, 64>}, {pipeline_mode = #tpu.pipeline_mode<synchronous>, transform_indices = @transform_14, window_bounds = array<i64: 1, 64>}, {pipeline_mode = #tpu.pipeline_mode<synchronous>, transform_indices = @transform_15, window_bounds = array<i64: 64, 32>}, {pipeline_mode = #tpu.pipeline_mode<synchronous>, transform_indices = @transform_16, window_bounds = array<i64: 1, 32>}, {transform_indices = @transform_17, window_bounds = array<i64: 8, 8>}, {transform_indices = @transform_18, window_bounds = array<i64: 8, 32>}]} {
    %c0 = arith.constant 0 : index
    %c0_0 = arith.constant 0 : index
    %0 = vector.load %arg1[%c0, %c0_0] : memref<8x32xf32, #tpu.memory_space<vmem>>, vector<8x32xf32>
    %c0_1 = arith.constant 0 : index
    %c0_2 = arith.constant 0 : index
    %1 = vector.load %arg2[%c0_1, %c0_2] : memref<32x64xf32, #tpu.memory_space<vmem>>, vector<32x64xf32>
    %c0_3 = arith.constant 0 : index
    %c0_4 = arith.constant 0 : index
    %2 = vector.load %arg3[%c0_3, %c0_4] : memref<1x64xf32, #tpu.memory_space<vmem>>, vector<1x64xf32>
    %cst = arith.constant dense<0.000000e+00> : vector<8x64xf32>
    %3 = tpu.matmul %0, %1, %cst {dimension_numbers = #tpu.dot_dimension_numbers<[1], [0], [0], [1], [0, 0, 1, 1], [], []>} : vector<8x32xf32>, vector<32x64xf32>, vector<8x64xf32> -> vector<8x64xf32>
    %4 = vector.broadcast %2 : vector<1x64xf32> to vector<8x64xf32>
    %5 = arith.addf %3, %4 : vector<8x64xf32>
    %cst_5 = arith.constant 0.000000e+00 : f32
    %6 = vector.broadcast %cst_5 : f32 to vector<8x64xf32>
    %7 = arith.maximumf %5, %6 : vector<8x64xf32>
    %c0_6 = arith.constant 0 : index
    %c0_7 = arith.constant 0 : index
    %8 = vector.load %arg4[%c0_6, %c0_7] : memref<64x48xf32, #tpu.memory_space<vmem>>, vector<64x48xf32>
    %c0_8 = arith.constant 0 : index
    %c0_9 = arith.constant 0 : index
    %9 = vector.load %arg5[%c0_8, %c0_9] : memref<1x48xf32, #tpu.memory_space<vmem>>, vector<1x48xf32>
    %cst_10 = arith.constant dense<0.000000e+00> : vector<8x48xf32>
    %10 = tpu.matmul %7, %8, %cst_10 {dimension_numbers = #tpu.dot_dimension_numbers<[1], [0], [0], [1], [0, 0, 1, 1], [], []>} : vector<8x64xf32>, vector<64x48xf32>, vector<8x48xf32> -> vector<8x48xf32>
    %11 = vector.broadcast %9 : vector<1x48xf32> to vector<8x48xf32>
    %12 = arith.addf %10, %11 : vector<8x48xf32>
    %cst_11 = arith.constant 0.000000e+00 : f32
    %13 = vector.broadcast %cst_11 : f32 to vector<8x48xf32>
    %14 = arith.maximumf %12, %13 : vector<8x48xf32>
    %c0_12 = arith.constant 0 : index
    %c0_13 = arith.constant 0 : index
    %15 = vector.load %arg6[%c0_12, %c0_13] : memref<48x16xf32, #tpu.memory_space<vmem>>, vector<48x16xf32>
    %c0_14 = arith.constant 0 : index
    %c0_15 = arith.constant 0 : index
    %16 = vector.load %arg7[%c0_14, %c0_15] : memref<1x16xf32, #tpu.memory_space<vmem>>, vector<1x16xf32>
    %cst_16 = arith.constant dense<0.000000e+00> : vector<8x16xf32>
    %17 = tpu.matmul %14, %15, %cst_16 {dimension_numbers = #tpu.dot_dimension_numbers<[1], [0], [0], [1], [0, 0, 1, 1], [], []>} : vector<8x48xf32>, vector<48x16xf32>, vector<8x16xf32> -> vector<8x16xf32>
    %18 = vector.broadcast %16 : vector<1x16xf32> to vector<8x16xf32>
    %19 = arith.addf %17, %18 : vector<8x16xf32>
    %cst_17 = arith.constant 0.000000e+00 : f32
    %20 = vector.broadcast %cst_17 : f32 to vector<8x16xf32>
    %21 = arith.maximumf %19, %20 : vector<8x16xf32>
    %c0_18 = arith.constant 0 : index
    %c0_19 = arith.constant 0 : index
    %22 = vector.load %arg8[%c0_18, %c0_19] : memref<16x8xf32, #tpu.memory_space<vmem>>, vector<16x8xf32>
    %c0_20 = arith.constant 0 : index
    %c0_21 = arith.constant 0 : index
    %23 = vector.load %arg9[%c0_20, %c0_21] : memref<1x8xf32, #tpu.memory_space<vmem>>, vector<1x8xf32>
    %cst_22 = arith.constant dense<0.000000e+00> : vector<8x8xf32>
    %24 = tpu.matmul %21, %22, %cst_22 {dimension_numbers = #tpu.dot_dimension_numbers<[1], [0], [0], [1], [0, 0, 1, 1], [], []>} : vector<8x16xf32>, vector<16x8xf32>, vector<8x8xf32> -> vector<8x8xf32>
    %25 = vector.broadcast %23 : vector<1x8xf32> to vector<8x8xf32>
    %26 = arith.addf %24, %25 : vector<8x8xf32>
    %c0_23 = arith.constant 0 : index
    %c0_24 = arith.constant 0 : index
    %27 = vector.load %arg18[%c0_23, %c0_24] : memref<8x8xf32, #tpu.memory_space<vmem>>, vector<8x8xf32>
    tpu.vector_store %arg18[%c0_23, %c0_24], %26 {strides = array<i32>} : memref<8x8xf32, #tpu.memory_space<vmem>>, vector<8x8xf32>,
    %c0_25 = arith.constant 0 : index
    %c0_26 = arith.constant 0 : index
    %28 = vector.load %arg10[%c0_25, %c0_26] : memref<8x16xf32, #tpu.memory_space<vmem>>, vector<8x16xf32>
    %c0_27 = arith.constant 0 : index
    %c0_28 = arith.constant 0 : index
    %29 = vector.load %arg11[%c0_27, %c0_28] : memref<1x16xf32, #tpu.memory_space<vmem>>, vector<1x16xf32>
    %cst_29 = arith.constant dense<0.000000e+00> : vector<8x16xf32>
    %30 = tpu.matmul %26, %28, %cst_29 {dimension_numbers = #tpu.dot_dimension_numbers<[1], [0], [0], [1], [0, 0, 1, 1], [], []>} : vector<8x8xf32>, vector<8x16xf32>, vector<8x16xf32> -> vector<8x16xf32>
    %31 = vector.broadcast %29 : vector<1x16xf32> to vector<8x16xf32>
    %32 = arith.addf %30, %31 : vector<8x16xf32>
    %cst_30 = arith.constant 0.000000e+00 : f32
    %33 = vector.broadcast %cst_30 : f32 to vector<8x16xf32>
    %34 = arith.maximumf %32, %33 : vector<8x16xf32>
    %c0_31 = arith.constant 0 : index
    %c0_32 = arith.constant 0 : index
    %35 = vector.load %arg12[%c0_31, %c0_32] : memref<16x48xf32, #tpu.memory_space<vmem>>, vector<16x48xf32>
    %c0_33 = arith.constant 0 : index
    %c0_34 = arith.constant 0 : index
    %36 = vector.load %arg13[%c0_33, %c0_34] : memref<1x48xf32, #tpu.memory_space<vmem>>, vector<1x48xf32>
    %cst_35 = arith.constant dense<0.000000e+00> : vector<8x48xf32>
    %37 = tpu.matmul %34, %35, %cst_35 {dimension_numbers = #tpu.dot_dimension_numbers<[1], [0], [0], [1], [0, 0, 1, 1], [], []>} : vector<8x16xf32>, vector<16x48xf32>, vector<8x48xf32> -> vector<8x48xf32>
    %38 = vector.broadcast %36 : vector<1x48xf32> to vector<8x48xf32>
    %39 = arith.addf %37, %38 : vector<8x48xf32>
    %cst_36 = arith.constant 0.000000e+00 : f32
    %40 = vector.broadcast %cst_36 : f32 to vector<8x48xf32>
    %41 = arith.maximumf %39, %40 : vector<8x48xf32>
    %c0_37 = arith.constant 0 : index
    %c0_38 = arith.constant 0 : index
    %42 = vector.load %arg14[%c0_37, %c0_38] : memref<48x64xf32, #tpu.memory_space<vmem>>, vector<48x64xf32>
    %c0_39 = arith.constant 0 : index
    %c0_40 = arith.constant 0 : index
    %43 = vector.load %arg15[%c0_39, %c0_40] : memref<1x64xf32, #tpu.memory_space<vmem>>, vector<1x64xf32>
    %cst_41 = arith.constant dense<0.000000e+00> : vector<8x64xf32>
    %44 = tpu.matmul %41, %42, %cst_41 {dimension_numbers = #tpu.dot_dimension_numbers<[1], [0], [0], [1], [0, 0, 1, 1], [], []>} : vector<8x48xf32>, vector<48x64xf32>, vector<8x64xf32> -> vector<8x64xf32>
    %45 = vector.broadcast %43 : vector<1x64xf32> to vector<8x64xf32>
    %46 = arith.addf %44, %45 : vector<8x64xf32>
    %cst_42 = arith.constant 0.000000e+00 : f32
    %47 = vector.broadcast %cst_42 : f32 to vector<8x64xf32>
    %48 = arith.maximumf %46, %47 : vector<8x64xf32>
    %c0_43 = arith.constant 0 : index
    %c0_44 = arith.constant 0 : index
    %49 = vector.load %arg16[%c0_43, %c0_44] : memref<64x32xf32, #tpu.memory_space<vmem>>, vector<64x32xf32>
    %c0_45 = arith.constant 0 : index
    %c0_46 = arith.constant 0 : index
    %50 = vector.load %arg17[%c0_45, %c0_46] : memref<1x32xf32, #tpu.memory_space<vmem>>, vector<1x32xf32>
    %cst_47 = arith.constant dense<0.000000e+00> : vector<8x32xf32>
    %51 = tpu.matmul %48, %49, %cst_47 {dimension_numbers = #tpu.dot_dimension_numbers<[1], [0], [0], [1], [0, 0, 1, 1], [], []>} : vector<8x64xf32>, vector<64x32xf32>, vector<8x32xf32> -> vector<8x32xf32>
    %52 = vector.broadcast %50 : vector<1x32xf32> to vector<8x32xf32>
    %53 = arith.addf %51, %52 : vector<8x32xf32>
    %c0_48 = arith.constant 0 : index
    %c0_49 = arith.constant 0 : index
    %54 = vector.load %arg19[%c0_48, %c0_49] : memref<8x32xf32, #tpu.memory_space<vmem>>, vector<8x32xf32>
    tpu.vector_store %arg19[%c0_48, %c0_49], %53 {strides = array<i32>} : memref<8x32xf32, #tpu.memory_space<vmem>>, vector<8x32xf32>,
    return
  }
  func.func @transform_0(%arg0: i32) -> (i32, i32) {
    %c0_i32 = arith.constant 0 : i32
    %c0_i32_0 = arith.constant 0 : i32
    return %arg0, %c0_i32 : i32, i32
  }
  func.func @transform_1(%arg0: i32) -> (i32, i32) {
    %c0_i32 = arith.constant 0 : i32
    %c0_i32_0 = arith.constant 0 : i32
    %c0_i32_1 = arith.constant 0 : i32
    return %c0_i32, %c0_i32_0 : i32, i32
  }
  func.func @transform_2(%arg0: i32) -> (i32, i32) {
    %c0_i32 = arith.constant 0 : i32
    %c0_i32_0 = arith.constant 0 : i32
    %c0_i32_1 = arith.constant 0 : i32
    return %c0_i32, %c0_i32_0 : i32, i32
  }
  func.func @transform_3(%arg0: i32) -> (i32, i32) {
    %c0_i32 = arith.constant 0 : i32
    %c0_i32_0 = arith.constant 0 : i32
    %c0_i32_1 = arith.constant 0 : i32
    return %c0_i32, %c0_i32_0 : i32, i32
  }
  func.func @transform_4(%arg0: i32) -> (i32, i32) {
    %c0_i32 = arith.constant 0 : i32
    %c0_i32_0 = arith.constant 0 : i32
    %c0_i32_1 = arith.constant 0 : i32
    return %c0_i32, %c0_i32_0 : i32, i32
  }
  func.func @transform_5(%arg0: i32) -> (i32, i32) {
    %c0_i32 = arith.constant 0 : i32
    %c0_i32_0 = arith.constant 0 : i32
    %c0_i32_1 = arith.constant 0 : i32
    return %c0_i32, %c0_i32_0 : i32, i32
  }
  func.func @transform_6(%arg0: i32) -> (i32, i32) {
    %c0_i32 = arith.constant 0 : i32
    %c0_i32_0 = arith.constant 0 : i32
    %c0_i32_1 = arith.constant 0 : i32
    return %c0_i32, %c0_i32_0 : i32, i32
  }
  func.func @transform_7(%arg0: i32) -> (i32, i32) {
    %c0_i32 = arith.constant 0 : i32
    %c0_i32_0 = arith.constant 0 : i32
    %c0_i32_1 = arith.constant 0 : i32
    return %c0_i32, %c0_i32_0 : i32, i32
  }
  func.func @transform_8(%arg0: i32) -> (i32, i32) {
    %c0_i32 = arith.constant 0 : i32
    %c0_i32_0 = arith.constant 0 : i32
    %c0_i32_1 = arith.constant 0 : i32
    return %c0_i32, %c0_i32_0 : i32, i32
  }
  func.func @transform_9(%arg0: i32) -> (i32, i32) {
    %c0_i32 = arith.constant 0 : i32
    %c0_i32_0 = arith.constant 0 : i32
    %c0_i32_1 = arith.constant 0 : i32
    return %c0_i32, %c0_i32_0 : i32, i32
  }
  func.func @transform_10(%arg0: i32) -> (i32, i32) {
    %c0_i32 = arith.constant 0 : i32
    %c0_i32_0 = arith.constant 0 : i32
    %c0_i32_1 = arith.constant 0 : i32
    return %c0_i32, %c0_i32_0 : i32, i32
  }
  func.func @transform_11(%arg0: i32) -> (i32, i32) {
    %c0_i32 = arith.constant 0 : i32
    %c0_i32_0 = arith.constant 0 : i32
    %c0_i32_1 = arith.constant 0 : i32
    return %c0_i32, %c0_i32_0 : i32, i32
  }
  func.func @transform_12(%arg0: i32) -> (i32, i32) {
    %c0_i32 = arith.constant 0 : i32
    %c0_i32_0 = arith.constant 0 : i32
    %c0_i32_1 = arith.constant 0 : i32
    return %c0_i32, %c0_i32_0 : i32, i32
  }
  func.func @transform_13(%arg0: i32) -> (i32, i32) {
    %c0_i32 = arith.constant 0 : i32
    %c0_i32_0 = arith.constant 0 : i32
    %c0_i32_1 = arith.constant 0 : i32
    return %c0_i32, %c0_i32_0 : i32, i32
  }
  func.func @transform_14(%arg0: i32) -> (i32, i32) {
    %c0_i32 = arith.constant 0 : i32
    %c0_i32_0 = arith.constant 0 : i32
    %c0_i32_1 = arith.constant 0 : i32
    return %c0_i32, %c0_i32_0 : i32, i32
  }
  func.func @transform_15(%arg0: i32) -> (i32, i32) {
    %c0_i32 = arith.constant 0 : i32
    %c0_i32_0 = arith.constant 0 : i32
    %c0_i32_1 = arith.constant 0 : i32
    return %c0_i32, %c0_i32_0 : i32, i32
  }
  func.func @transform_16(%arg0: i32) -> (i32, i32) {
    %c0_i32 = arith.constant 0 : i32
    %c0_i32_0 = arith.constant 0 : i32
    %c0_i32_1 = arith.constant 0 : i32
    return %c0_i32, %c0_i32_0 : i32, i32
  }
  func.func @transform_17(%arg0: i32) -> (i32, i32) {
    %c0_i32 = arith.constant 0 : i32
    %c0_i32_0 = arith.constant 0 : i32
    return %arg0, %c0_i32 : i32, i32
  }
  func.func @transform_18(%arg0: i32) -> (i32, i32) {
    %c0_i32 = arith.constant 0 : i32
    %c0_i32_0 = arith.constant 0 : i32
    return %arg0, %c0_i32 : i32, i32
  }
}

</mosaic_0001>

<bundles_post_ra>
// kernel: tpu_custom_call.1
= control target key start
LH: loop header
LB: loop body
LE: loop exit
PB: predicated region body
PF: predicated region fallthrough
CT: control target
= control target key end

     0   :  { %s1350_s0 = inlined_call_operand.vmem [shape: f32[8,32], index: 0, kind: input, shape index: {}]   ;;  %s1351_s1 = inlined_call_operand.vmem [shape: f32[32,64], index: 1, kind: input, shape index: {}]   ;;  %s1352_s2 = inlined_call_operand.vmem [shape: f32[1,64], index: 2, kind: input, shape index: {}]   ;;  %s1353_s3 = inlined_call_operand.vmem [shape: f32[64,48], index: 3, kind: input, shape index: {}]   ;;  %s1354_s4 = inlined_call_operand.vmem [shape: f32[1,48], index: 4, kind: input, shape index: {}]   ;;  %s1355_s5 = inlined_call_operand.vmem [shape: f32[48,16], index: 5, kind: input, shape index: {}]   ;;  %s1356_s6 = inlined_call_operand.vmem [shape: f32[1,16], index: 6, kind: input, shape index: {}]   ;;  %s1357_s7 = inlined_call_operand.vmem [shape: f32[16,8], index: 7, kind: input, shape index: {}]   ;;  %s1358_s8 = inlined_call_operand.vmem [shape: f32[1,8], index: 8, kind: input, shape index: {}]   ;;  %s1359_s9 = inlined_call_operand.vmem [shape: f32[8,16], index: 9, kind: input, shape index: {}]   ;;  %s1360_s10 = inlined_call_operand.vmem [shape: f32[1,16], index: 10, kind: input, shape index: {}]   ;;  %s1361_s11 = inlined_call_operand.vmem [shape: f32[16,48], index: 11, kind: input, shape index: {}]   ;;  %s1362_s12 = inlined_call_operand.vmem [shape: f32[1,48], index: 12, kind: input, shape index: {}]   ;;  %s1363_s13 = inlined_call_operand.vmem [shape: f32[48,64], index: 13, kind: input, shape index: {}]   ;;  %s1364_s14 = inlined_call_operand.vmem [shape: f32[1,64], index: 14, kind: input, shape index: {}]   ;;  %s1365_s15 = inlined_call_operand.vmem [shape: f32[64,32], index: 15, kind: input, shape index: {}]   ;;  %s1366_s16 = inlined_call_operand.vmem [shape: f32[1,32], index: 16, kind: input, shape index: {}]   ;;  %s1367_s17 = inlined_call_operand.hbm [shape: f32[8,8], index: 17, kind: output, shape index: {0}]   ;;  %s1368_s18 = inlined_call_operand.hbm [shape: f32[8,32], index: 18, kind: output, shape index: {1}]  }
   0x1   :  { %1370 = sst [smem:[#allocation8_spill]] %s1350_s0 }
   0x2   :  { %1371 = sst [smem:[#allocation9_spill]] %s1351_s1 }
   0x3   :  { %1372 = sst [smem:[#allocation10_spill]] %s1352_s2 }
   0x4   :  { %24 = vsyncpa [#allocation3], 0  ;;  %s1373_s29 = sld [smem:[#allocation9_spill]]  ;;  %v1045_v3 = vmov 0.0|0.0   ;;  %vm1046_vm0 = vmmov 0   ;;  %v1047_v6 = vmov 0.0  }
   0x5   :  { %938 = vmatprep.subr.bf16.mxu0 %v1045_v3  ;;  %848 = vmatprep.mubr.msk.f32.mxu0 %vm1046_vm0, %v1047_v6  ;;  %v147_v7 = vld [vmem:[%s1353_s3] sm:$0xff]  ;;  %v148_v8 = vld [vmem:[%s1353_s3 + $0x8] sm:$0xff]  ;;  %v149_v9 = vld [vmem:[%s1353_s3 + $0x10] sm:$0xff] }
   0x6   :  { %944 = vmatprep.subr.bf16.mxu1 %v1045_v3  ;;  %v150_v10 = vld [vmem:[%s1353_s3 + $0x18] sm:$0xff]  ;;  %867 = vmatprep.mubr.msk.f32.mxu1 %vm1046_vm0, %v1047_v6  ;;  %v945_v12 = vpack.c.bf16 %v148_v8, %v147_v7 }
   0xa   :  { %v61_v0 = vld [vmem:[%s1373_s29] sm:$0xff]  ;;  %v62_v1 = vld [vmem:[%s1373_s29 + $0x8] sm:$0xff]  ;;  %v63_v2 = vld [vmem:[%s1373_s29 + $0x10] sm:$0xff] }
   0xb   :  { %v939_v4 = vpack.c.bf16 %v62_v1, %v61_v0  ;;  %v64_v5 = vld [vmem:[%s1373_s29 + $0x18] sm:$0xff] }
   0xc   :  { %v942_v11 = vpack.c.bf16 %v64_v5, %v63_v2 }
   0xd   :  { %940 = vmatpush3.bf16.msra.mxu0 %v939_v4 }
   0xe   :  { %941 = vmatprep.subr.bf16.mxu0 %v1045_v3 }
   0xf   :  { %25 = vsyncpa [#allocation5], 0  ;;  %946 = vmatpush3.bf16.msra.mxu1 %v945_v12  ;;  %v948_v13 = vpack.c.bf16 %v150_v10, %v149_v9  ;;  %v151_v14 = vld [vmem:[%s1353_s3 + $0x20] sm:$0xff]  ;;  %v152_v15 = vld [vmem:[%s1353_s3 + $0x28] sm:$0xff]  ;;  %s1374_s21 = sld [smem:[#allocation8_spill]]  ;;  %vm72_vm1 = vcmask 261120  }
  0x10   :  { %947 = vmatprep.subr.bf16.mxu1 %v1045_v3  ;;  %v951_v17 = vpack.c.bf16 %v152_v15, %v151_v14  ;;  %v153_v18 = vld [vmem:[%s1353_s3 + $0x30] sm:$0xff]  ;;  %v154_v19 = vld [vmem:[%s1353_s3 + $0x38] sm:$0xff]  ;;  %v237_v21 = vld [vmem:[%s1355_s5] sm:$0xff]  ;;  %s1375_s20 = sld [smem:[#allocation10_spill]]  ;;  %vm162_vm2 = vcmask 523264   ;;  %vm250_vm3 = vcmask 392192  }
  0x11   :  { %943 = vmatpush3.bf16.msra.mxu0 %v942_v11  ;;  %v954_v20 = vpack.c.bf16 %v154_v19, %v153_v18  ;;  %v238_v22 = vld [vmem:[%s1355_s5 + $0x8] sm:$0xff]  ;;  %v239_v23 = vld [vmem:[%s1355_s5 + $0x10] sm:$0xff]  ;;  %v240_v25 = vld [vmem:[%s1355_s5 + $0x18] sm:$0xff]  ;;  %vm334_vm4 = vcmask 130048   ;;  %vm408_vm5 = vcmask 64512  }
  0x12   :  { %956 = vmatprep.subr.bf16.mxu0 %v1045_v3  ;;  %v957_v24 = vpack.c.bf16 %v238_v22, %v237_v21  ;;  %v960_v26 = vpack.c.bf16 %v240_v25, %v239_v23  ;;  %v241_v32 = vld [vmem:[%s1355_s5 + $0x20] sm:$0xff]  ;;  %v242_v33 = vld [vmem:[%s1355_s5 + $0x28] sm:$0xff]  ;;  %v577_v58 = vld [vmem:[%s1363_s13 + $0x10] sm:$0xff] }
  0x13   :  { %949 = vmatpush3.bf16.msra.mxu1 %v948_v13  ;;  %v963_v34 = vpack.c.bf16 %v242_v33, %v241_v32  ;;  %v781_v35 = vld [vmem:[%s1354_s4] ss:$0 sm:$0xff]  ;;  %v326_v41 = vld [vmem:[%s1357_s7 + $0x8] sm:$0xff]  ;;  %v578_v60 = vld [vmem:[%s1363_s13 + $0x18] sm:$0xff] }
  0x14   :  { %950 = vmatprep.subr.bf16.mxu1 %v1045_v3  ;;  %v325_v40 = vld [vmem:[%s1357_s7] sm:$0xff]  ;;  %v493_v54 = vld [vmem:[%s1361_s11 + $0x8] sm:$0xff]  ;;  %v975_v61 = vpack.c.bf16 %v578_v60, %v577_v58  ;;  %v665_v11 = vld [vmem:[%s1365_s15 + $0x18] sm:$0xff] }
  0x15   :  { %v60_v16 = vld [vmem:[%s1374_s21] sm:$0xff]  ;;  %v966_v42 = vpack.c.bf16 %v326_v41, %v325_v40  ;;  %v576_v57 = vld [vmem:[%s1363_s13 + $0x8] sm:$0xff]  ;;  %v668_v21 = vld [vmem:[%s1365_s15 + $0x30] sm:$0xff] }
  0x16   :  { %849 = vmatmul.mubr.msk.f32.vlgmr.msra.gmra.mrb[0].mxu0 %vm72_vm1, %v60_v16  ;;  %v779_v27 = vld [vmem:[%s1375_s20] ss:$0 sm:$0xff]  ;;  %v580_v5 = vld [vmem:[%s1363_s13 + $0x28] sm:$0xff]  ;;  %v669_v22 = vld [vmem:[%s1365_s15 + $0x38] sm:$0xff] }
  0x17   :  { %882 = vmatprep.mubr.msk.f32.mxu0 %vm1046_vm0, %v1047_v6  ;;  %952 = vmatpush3.bf16.msra.mxu1 %v951_v17  ;;  %v410_v43 = vld [vmem:[%s1359_s9] sm:$0xff]  ;;  %v663_v9 = vld [vmem:[%s1365_s15 + $0x8] sm:$0xff]  ;;  %v990_v23 = vpack.c.bf16 %v669_v22, %v668_v21 }
  0x18   :  { %953 = vmatprep.subr.bf16.mxu1 %v1045_v3  ;;  %958 = vmatpush3.bf16.msra.mxu0 %v957_v24  ;;  %v783_v44 = vld [vmem:[%s1356_s6] ss:$0 sm:$0xff]  ;;  %v667_v14 = vld [vmem:[%s1365_s15 + $0x28] sm:$0xff] }
  0x19   :  { %959 = vmatprep.subr.bf16.mxu0 %v1045_v3  ;;  %v785_v49 = vld [vmem:[%s1358_s8] ss:$0 sm:$0xff] }
  0x1a   :  { %v492_v53 = vld [vmem:[%s1361_s11] sm:$0xff] }
  0x1b   :  { %955 = vmatpush3.bf16.msra.mxu1 %v954_v20  ;;  %v969_v55 = vpack.c.bf16 %v493_v54, %v492_v53  ;;  %v575_v56 = vld [vmem:[%s1363_s13] sm:$0xff] }
  0x1c   :  { %965 = vmatprep.subr.bf16.mxu1 %v1045_v3  ;;  %961 = vmatpush3.bf16.msra.mxu0 %v960_v26  ;;  %v972_v59 = vpack.c.bf16 %v576_v57, %v575_v56  ;;  %v787_v62 = vld [vmem:[%s1360_s10] ss:$0 sm:$0xff] }
  0x1d   :  { %962 = vmatprep.subr.bf16.mxu0 %v1045_v3  ;;  %v579_v4 = vld [vmem:[%s1363_s13 + $0x20] sm:$0xff] }
  0x1e   :  { %v978_v7 = vpack.c.bf16 %v580_v5, %v579_v4  ;;  %v662_v8 = vld [vmem:[%s1365_s15] sm:$0xff] }
  0x1f   :  { %v981_v10 = vpack.c.bf16 %v663_v9, %v662_v8  ;;  %v666_v13 = vld [vmem:[%s1365_s15 + $0x20] sm:$0xff] }
  0x20   :  { %964 = vmatpush3.bf16.msra.mxu0 %v963_v34  ;;  %v987_v15 = vpack.c.bf16 %v667_v14, %v666_v13  ;;  %v789_v16 = vld [vmem:[%s1362_s12] ss:$0 sm:$0xff]  ;;  %s1048_s12 = smov [#allocation2]  }
  0x21   :  { %892 = vmatprep.subr.mxu0 %v1047_v6  ;;  %s757_s26 = sshll.u32 %s1048_s12, 4  ;;  %s758_s26 = int_to_ptr.vmem [resolvable:$true] %s757_s26 }
  0x22   :  { %s997_s5 = scalar_lea.vmem %s758_s26, 128  ;;  %p1002_p1 = scmp.lt.s32.totalorder %s758_s26, %s758_s26 }
  0x23   :  { %p998_p0 = scmp.ne.s32.totalorder %s758_s26, %s997_s5  ;;  %p1003_p2 = scmp.lt.s32.totalorder %s997_s5, %s997_s5 }
  0x25   :  { %p1004_p3 = por %p1003_p2, %p1002_p1 }
  0x27   :  { %p1005_p4 = pnand %p1004_p3, %p998_p0 }
  0xe9   :  { %v142_v28 = vpop.f32.mrb[0].mxu0 }
  0xea   :  { %v143_v29 = vadd.f32 %v779_v27, %v142_v28  ;;  %v850_v30 = vpop.f32.mrb[1].mxu0 }
  0xec   :  { %v146_v31 = vmax.f32 %v143_v29, 0.0 }
  0xee   :  { %868 = vmatmul.mubr.msk.f32.vlgmr.msra.gmra.mrb[0].mxu1 %vm162_vm2, %v146_v31 }
  0xef   :  { %889 = vmatprep.mubr.msk.f32.mxu1 %vm1046_vm0, %v1047_v6  ;;  %967 = vmatpush3.bf16.msra.mxu1 %v966_v42 }
  0xf0   :  { %968 = vmatprep.subr.bf16.mxu1 %v1045_v3 }
 0x1c1   :  { %v232_v36 = vpop.f32.mrb[0].mxu1 }
 0x1c2   :  { %v233_v37 = vadd.f32 %v781_v35, %v232_v36  ;;  %v869_v38 = vpop.f32.mrb[1].mxu1 }
 0x1c4   :  { %v236_v39 = vmax.f32 %v233_v37, 0.0 }
 0x1c6   :  { %883 = vmatmul.mubr.msk.f32.vlgmr.msra.gmra.mrb[2].mxu0 %vm250_vm3, %v236_v39 }
 0x1c7   :  { %894 = vmatprep.mubr.msk.f32.mxu0 %vm1046_vm0, %v1047_v6  ;;  %893 = vmatpush3.msra.mxu0 %v410_v43 }
 0x1c8   :  { %971 = vmatprep.subr.bf16.mxu0 %v1045_v3 }
 0x299   :  { %v320_v45 = vpop.f32.mrb[2].mxu0 }
 0x29a   :  { %v321_v46 = vadd.f32 %v783_v44, %v320_v45  ;;  %v884_v47 = vpop.f32.mrb[3].mxu0 }
 0x29c   :  { %v324_v48 = vmax.f32 %v321_v46, 0.0 }
 0x29e   :  { %890 = vmatmul.mubr.msk.f32.vlgmr.msra.gmra.mrb[2].mxu1 %vm334_vm4, %v324_v48 }
 0x29f   :  { %901 = vmatprep.mubr.msk.f32.mxu1 %vm1046_vm0, %v1047_v6  ;;  %970 = vmatpush3.bf16.msra.mxu1 %v969_v55 }
 0x2a0   :  { %980 = vmatprep.subr.bf16.mxu1 %v1045_v3 }
 0x371   :  { %v404_v50 = vpop.f32.mrb[2].mxu1 }
 0x372   :  { %v405_v51 = vadd.f32 %v785_v49, %v404_v50  ;;  %v891_v52 = vpop.f32.mrb[3].mxu1 }
 0x374   :  { %895 = vmatmul.mubr.msk.f32.vlgmr.msra.gmra.mrb[4].mxu0 %vm408_vm5, %v405_v51  ;;  %409 = vst.msk [vmem:[#allocation2] sm:$0xff] %vm408_vm5, %v405_v51 }
 0x375   :  { %916 = vmatprep.mubr.msk.f32.mxu0 %vm1046_vm0, %v1047_v6  ;;  %973 = vmatpush3.bf16.msra.mxu0 %v972_v59 }
 0x376   :  { %974 = vmatprep.subr.bf16.mxu0 %v1045_v3 }
 0x379   :  { %976 = vmatpush3.bf16.msra.mxu0 %v975_v61 }
 0x37a   :  { %977 = vmatprep.subr.bf16.mxu0 %v1045_v3 }
 0x37d   :  { %979 = vmatpush3.bf16.msra.mxu0 %v978_v7 }
 0x447   :  { %v487_v63 = vpop.f32.mrb[4].mxu0 }
 0x448   :  { %v488_v0 = vadd.f32 %v787_v62, %v487_v63  ;;  %v896_v1 = vpop.f32.mrb[5].mxu0 }
 0x44a   :  { %v491_v2 = vmax.f32 %v488_v0, 0.0 }
 0x44c   :  { %902 = vmatmul.mubr.msk.f32.vlgmr.msra.gmra.mrb[4].mxu1 %vm334_vm4, %v491_v2 }
 0x44d   :  { %935 = vmatprep.mubr.msk.f32.mxu1 %vm1046_vm0, %v1047_v6  ;;  %v664_v6 = vld [vmem:[%s1365_s15 + $0x10] sm:$0xff]  ;;  %982 = vmatpush3.bf16.msra.mxu1 %v981_v10 }
 0x44e   :  { %v984_v12 = vpack.c.bf16 %v665_v11, %v664_v6  ;;  %983 = vmatprep.subr.bf16.mxu1 %v1045_v3 }
 0x451   :  { %985 = vmatpush3.bf16.msra.mxu1 %v984_v12 }
 0x452   :  { %986 = vmatprep.subr.bf16.mxu1 %v1045_v3 }
 0x455   :  { %988 = vmatpush3.bf16.msra.mxu1 %v987_v15 }
 0x456   :  { %989 = vmatprep.subr.bf16.mxu1 %v1045_v3  ;;  %v791_v3 = vld [vmem:[%s1364_s14] ss:$0 sm:$0xff] }
 0x459   :  { %991 = vmatpush3.bf16.msra.mxu1 %v990_v23 }
 0x51f   :  { %v570_v17 = vpop.f32.mrb[4].mxu1 }
 0x520   :  { %v571_v18 = vadd.f32 %v789_v16, %v570_v17  ;;  %v903_v19 = vpop.f32.mrb[5].mxu1 }
 0x522   :  { %v574_v20 = vmax.f32 %v571_v18, 0.0 }
 0x524   :  { %917 = vmatmul.mubr.msk.f32.vlgmr.msra.gmra.mrb[6].mxu0 %vm250_vm3, %v574_v20 }
 0x5f7   :  { %v657_v24 = vpop.f32.mrb[6].mxu0 }
 0x5f8   :  { %v658_v25 = vadd.f32 %v791_v3, %v657_v24  ;;  %v918_v26 = vpop.f32.mrb[7].mxu0 }
 0x5fa   :  { %v661_v27 = vmax.f32 %v658_v25, 0.0 }
 0x5fc   :  { %936 = vmatmul.mubr.msk.f32.vlgmr.msra.gmra.mrb[6].mxu1 %vm162_vm2, %v661_v27 }
 0x5fd   :  { %1008 = shalt.err (!%p1005_p4)
}
 0x5fe   :  { %s1009_s14 = scalar_lea.hbm %s1367_s17, 128 }
 0x5ff   :  { %p1010_p5 = scmp.ne.s32.totalorder %s1367_s17, %s1009_s14  ;;  %p1013_p6 = scmp.lt.u32.totalorder %s1009_s14, %s1367_s17 }
 0x601   :  { %p1015_p7 = pnand %p1013_p6, %p1010_p5 }
 0x603   :  { %1018 = shalt.err (!%p1015_p7)
}
 0x604   :  { %760 = dma.vmem_to_hbm [thread:$0]  %s758_s26, 128, %s1367_s17, [#allocation3]   ;;  %v793_v28 = vld [vmem:[%s1366_s16] ss:$0 sm:$0xff] }
 0x605   :  { %s1049_s6 = smov [#allocation4]  }
 0x606   :  { %s767_s9 = sshll.u32 %s1049_s6, 4  ;;  %s768_s9 = int_to_ptr.vmem [resolvable:$true] %s767_s9 }
 0x607   :  { %s1019_s13 = scalar_lea.vmem %s768_s9, 128  ;;  %p1024_p9 = scmp.lt.s32.totalorder %s768_s9, %s768_s9 }
 0x608   :  { %p1020_p8 = scmp.ne.s32.totalorder %s768_s9, %s1019_s13  ;;  %p1025_p10 = scmp.lt.s32.totalorder %s1019_s13, %s1019_s13 }
 0x60a   :  { %p1026_p11 = por %p1025_p10, %p1024_p9 }
 0x60c   :  { %p1027_p12 = pnand %p1026_p11, %p1020_p8 }
 0x6cf   :  { %v746_v29 = vpop.f32.mrb[6].mxu1 }
 0x6d0   :  { %v747_v30 = vadd.f32 %v793_v28, %v746_v29  ;;  %v937_v31 = vpop.f32.mrb[7].mxu1 }
 0x6d2   :  { %750 = vst.msk [vmem:[#allocation4] sm:$0xff] %vm72_vm1, %v747_v30 }
 0x6d3   :  { %1030 = shalt.err (!%p1027_p12)
}
 0x6d4   :  { %s1031_s1 = scalar_lea.hbm %s1368_s18, 128 }
 0x6d5   :  { %p1032_p13 = scmp.ne.s32.totalorder %s1368_s18, %s1031_s1  ;;  %p1035_p0 = scmp.lt.u32.totalorder %s1031_s1, %s1368_s18 }
 0x6d7   :  { %p1037_p1 = pnand %p1035_p0, %p1032_p13 }
 0x6d9   :  { %1040 = shalt.err (!%p1037_p1)
}
 0x6da   :  { %770 = dma.vmem_to_hbm [thread:$0]  %s768_s9, 128, %s1368_s18, [#allocation5]  }
 0x6db   :  { %1041 = dma.done.wait [#allocation3], 128  }
 0x6dc   :  { %1042 = vsyncadd [#allocation3], 4294967168 }
 0x6dd   :  { %1043 = dma.done.wait [#allocation5], 128  }
 0x6de   :  { %1044 = vsyncadd [#allocation5], 4294967168 }
 0x6df   :  { %777 = vsyncpa [#allocation3], 1 }
 0x6e0   :  { %778 = vsyncpa [#allocation5], 1 }

</bundles_post_ra>
